<compile_context>
chip_gen: v7x
topology: tpu7x:2x2x1
jax: 0.10.0
libtpu: 0.0.40
codegen_flags: <defaults>
</compile_context>

<pallas_src>
import functools

import jax
import jax.numpy as jnp
from jax.experimental import pallas as pl
from jax.experimental.pallas import tpu as pltpu


PACK = 8  # points per packed row; PACK*C2 = 128 lanes -> dense output stores


def _round_up(x, m):
    return (x + m - 1) // m * m


def _choose_tile_rows(n_rows, max_rows, target_steps):
    """Largest multiple of 8 that divides n_rows, is <= max_rows and (when the problem
    is big enough) still leaves at least `target_steps` grid steps."""
    cap = min(max_rows, max(8, (n_rows // target_steps) // 8 * 8))
    best = 8
    for d in range(8, cap + 1, 8):
        if n_rows % d == 0:
            best = d
    return best


def shared_mlp_kernel(x_ref, w1_ref, b1_ref, w2_ref, b2_ref, o_ref, *, row_chunk):
    # x_ref : (tr, 8*Cin)   packed rows: 8 points x Cin channels each
    # w1_ref: (8*Cin, 8*C1) block-diagonal layer-1 weights
    # b1_ref: (1, 8*C1)     layer-1 bias, tiled 8x
    # w2_ref: (8*C1, 8*C2)  block-diagonal layer-2 weights
    # b2_ref: (1, 8*C2)     layer-2 bias, tiled 8x
    # o_ref : (tr, 8*C2)    packed output rows (8*C2 = 128 -> dense 128-lane stores)
    #
    # Hoist weight / bias loads out of the chunk loop: loaded once per grid step.
    w1 = w1_ref[...]
    b1 = b1_ref[...]
    w2 = w2_ref[...]
    b2 = b2_ref[...]

    n_chunks = x_ref.shape[0] // row_chunk

    def body(ci, carry):
        r0 = pl.multiple_of(ci * row_chunk, row_chunk)
        xs = x_ref[pl.ds(r0, row_chunk), :]                       # (row_chunk, 8*Cin)
        # Layer 1: Conv2d(1x1) + ReLU on 8 points at a time (block-diagonal weights), f32.
        h = jnp.dot(xs, w1, preferred_element_type=jnp.float32)   # (row_chunk, 8*C1)
        h = jnp.maximum(h + b1, 0.0)
        # Layer 2: Conv2d(1x1) + ReLU, producing the packed output layout directly.
        y = jnp.dot(h, w2, preferred_element_type=jnp.float32)    # (row_chunk, 8*C2)
        y = jnp.maximum(y + b2, 0.0)
        o_ref[pl.ds(r0, row_chunk), :] = y.astype(o_ref.dtype)    # 128-lane dense store
        return carry

    # Bounded unroll keeps LLO scheduling visibility without blowing the 64-vreg file.
    jax.lax.fori_loop(0, n_chunks, body, 0, unroll=min(2, n_chunks))


def shared_mlp(x, w1, b1, w2, b2, *, max_tile_points=16384, target_grid_steps=8):
    """x: (B, W, H, Cin) -> (B, W, H, C2).  w1: (C1, Cin), w2: (C2, C1) (PyTorch conv layout)."""
    B, W, H, Cin = x.shape
    C1 = w1.shape[0]
    C2 = w2.shape[0]
    M = B * W * H
    dt = x.dtype

    # Block-diagonal weights / tiled biases so packed rows are consumed and produced
    # directly by plain matmuls.  Built once, tiny (32x256 f32 and 256x128 f32).
    eye = jnp.eye(PACK, dtype=dt)
    w1_blk = jnp.einsum("jk,oc->jcko", eye, w1.astype(dt)).reshape(PACK * Cin, PACK * C1)
    w2_blk = jnp.einsum("jk,oc->jcko", eye, w2.astype(dt)).reshape(PACK * C1, PACK * C2)
    b1_blk = jnp.tile(b1.astype(dt), PACK).reshape(1, PACK * C1)
    b2_blk = jnp.tile(b2.astype(dt), PACK).reshape(1, PACK * C2)

    xf = x.reshape(M, Cin)
    if M % (8 * PACK) == 0:
        Mp = M  # fast path: all repacking below is metadata-only, no extra HBM pass
    else:
        # Fallback: pad so the packed row count is a multiple of 8 (sublane granule).
        # TODO(synk): replace with in-kernel masking of the last tile to avoid this copy.
        Mp = _round_up(M, 8 * PACK)
        xf = jnp.pad(xf, ((0, Mp - M), (0, 0)))
    n_rows = Mp // PACK
    x_packed = xf.reshape(n_rows, PACK * Cin)          # (M/8, 32): 8 points per row

    tr = _choose_tile_rows(n_rows, max_rows=max_tile_points // PACK,
                           target_steps=target_grid_steps)
    grid = (n_rows // tr,)
    row_chunk = 32 if tr % 32 == 0 else (16 if tr % 16 == 0 else 8)

    flops = 2 * n_rows * (PACK * Cin * PACK * C1 + PACK * C1 * PACK * C2)
    bytes_accessed = (n_rows * (PACK * Cin + PACK * C2)
                      + w1_blk.size + w2_blk.size + b1_blk.size + b2_blk.size) * dt.itemsize

    out_packed = pl.pallas_call(
        functools.partial(shared_mlp_kernel, row_chunk=row_chunk),
        out_shape=jax.ShapeDtypeStruct((n_rows, PACK * C2), dt),
        grid_spec=pltpu.PrefetchScalarGridSpec(
            num_scalar_prefetch=0,
            grid=grid,
            in_specs=[
                pl.BlockSpec((tr, PACK * Cin), lambda i: (i, 0)),         # packed input rows
                pl.BlockSpec((PACK * Cin, PACK * C1), lambda i: (0, 0)),  # W1 block-diag
                pl.BlockSpec((1, PACK * C1), lambda i: (0, 0)),           # b1 (tiled 8x)
                pl.BlockSpec((PACK * C1, PACK * C2), lambda i: (0, 0)),   # W2 block-diag
                pl.BlockSpec((1, PACK * C2), lambda i: (0, 0)),           # b2 (tiled 8x)
            ],
            out_specs=pl.BlockSpec((tr, PACK * C2), lambda i: (i, 0)),    # 128-lane dense
        ),
        compiler_params=pltpu.CompilerParams(
            dimension_semantics=("parallel",),
            vmem_limit_bytes=32 * 1024 * 1024,
        ),
        cost_estimate=pl.CostEstimate(
            flops=flops, transcendentals=0, bytes_accessed=bytes_accessed),
    )(x_packed, w1_blk, b1_blk, w2_blk, b2_blk)

    out = out_packed.reshape(Mp, C2)                   # metadata-only
    if Mp != M:
        out = out[:M]
    return out.reshape(B, W, H, C2)


if __name__ == "__main__":
    # Small shapes consistent with the module: batch=2, spatial=16x16, in_channels=4,
    # out_channels=[32, 16].
    B, W, H, Cin = 2, 16, 16, 4
    C1, C2 = 32, 16

    key = jax.random.PRNGKey(0)
    kx, kw1, kb1, kw2, kb2 = jax.random.split(key, 5)

    x = jax.random.normal(kx, (B, W, H, Cin), dtype=jnp.float32)

    # PyTorch Conv2d(1x1) weights are (out_ch, in_ch, 1, 1); stored here as (out_ch, in_ch).
    w1 = jax.random.normal(kw1, (C1, Cin), dtype=jnp.float32) * 0.1
    b1 = jax.random.normal(kb1, (C1,), dtype=jnp.float32) * 0.1
    w2 = jax.random.normal(kw2, (C2, C1), dtype=jnp.float32) * 0.1
    b2 = jax.random.normal(kb2, (C2,), dtype=jnp.float32) * 0.1

    out = jax.block_until_ready(jax.jit(shared_mlp)(x, w1, b1, w2, b2))

    # Pure-JAX f32 reference of the same forward pass (HIGHEST precision for the dots).
    xf = x.reshape(-1, Cin)
    h_ref = jnp.maximum(
        jnp.dot(xf, w1.T, precision=jax.lax.Precision.HIGHEST) + b1[None, :], 0.0)
    y_ref = jnp.maximum(
        jnp.dot(h_ref, w2.T, precision=jax.lax.Precision.HIGHEST) + b2[None, :], 0.0)
    y_ref = y_ref.reshape(B, W, H, C2)

    assert out.shape == (B, W, H, C2)
    # f32 end-to-end now (no bf16 casts); tolerance tightened 10x vs the previous version.
    err = float(jnp.max(jnp.abs(out - y_ref)))
    assert jnp.allclose(out, y_ref, atol=1e-3, rtol=1e-3), f"max abs err {err}"

    print("KERNEL_OK")
</pallas_src>

<mosaic_0001>
module attributes {stable_mosaic.version = 11 : i64} {
  func.func @shared_mlp_kernel(%arg0: i32, %arg1: memref<8x32xf32, #tpu.memory_space<vmem>>, %arg2: memref<32x256xf32, #tpu.memory_space<vmem>>, %arg3: memref<1x256xf32, #tpu.memory_space<vmem>>, %arg4: memref<256x128xf32, #tpu.memory_space<vmem>>, %arg5: memref<1x128xf32, #tpu.memory_space<vmem>>, %arg6: memref<8x128xf32, #tpu.memory_space<vmem>>) attributes {dimension_semantics = [#tpu.dimension_semantics<parallel>], iteration_bounds = array<i64: 8>, scalar_prefetch = 0 : i64, scratch_operands = 0 : i64, tpu.core_type = #tpu.core_type<tc>, window_params = [{transform_indices = @transform_0, window_bounds = array<i64: 8, 32>}, {pipeline_mode = #tpu.pipeline_mode<synchronous>, transform_indices = @transform_1, window_bounds = array<i64: 32, 256>}, {pipeline_mode = #tpu.pipeline_mode<synchronous>, transform_indices = @transform_2, window_bounds = array<i64: 1, 256>}, {pipeline_mode = #tpu.pipeline_mode<synchronous>, transform_indices = @transform_3, window_bounds = array<i64: 256, 128>}, {pipeline_mode = #tpu.pipeline_mode<synchronous>, transform_indices = @transform_4, window_bounds = array<i64: 1, 128>}, {transform_indices = @transform_5, window_bounds = array<i64: 8, 128>}]} {
    %c0 = arith.constant 0 : index
    %c0_0 = arith.constant 0 : index
    %0 = vector.load %arg2[%c0, %c0_0] : memref<32x256xf32, #tpu.memory_space<vmem>>, vector<32x256xf32>
    %c0_1 = arith.constant 0 : index
    %c0_2 = arith.constant 0 : index
    %1 = vector.load %arg3[%c0_1, %c0_2] : memref<1x256xf32, #tpu.memory_space<vmem>>, vector<1x256xf32>
    %c0_3 = arith.constant 0 : index
    %c0_4 = arith.constant 0 : index
    %2 = vector.load %arg4[%c0_3, %c0_4] : memref<256x128xf32, #tpu.memory_space<vmem>>, vector<256x128xf32>
    %c0_5 = arith.constant 0 : index
    %c0_6 = arith.constant 0 : index
    %3 = vector.load %arg5[%c0_5, %c0_6] : memref<1x128xf32, #tpu.memory_space<vmem>>, vector<1x128xf32>
    %c0_i32 = arith.constant 0 : i32
    %c8_i32 = arith.constant 8 : i32
    %4 = arith.muli %c0_i32, %c8_i32 : i32
    %5 = tpu.assume_multiple %4, 8 : i32
    %6 = arith.index_cast %5 : i32 to index
    %c0_7 = arith.constant 0 : index
    %7 = vector.load %arg1[%6, %c0_7] : memref<8x32xf32, #tpu.memory_space<vmem>>, vector<8x32xf32>
    %cst = arith.constant dense<0.000000e+00> : vector<8x256xf32>
    %8 = tpu.matmul %7, %0, %cst {dimension_numbers = #tpu.dot_dimension_numbers<[1], [0], [0], [1], [0, 0, 1, 1], [], []>} : vector<8x32xf32>, vector<32x256xf32>, vector<8x256xf32> -> vector<8x256xf32>
    %9 = vector.broadcast %1 : vector<1x256xf32> to vector<8x256xf32>
    %10 = arith.addf %8, %9 : vector<8x256xf32>
    %cst_8 = arith.constant 0.000000e+00 : f32
    %11 = vector.broadcast %cst_8 : f32 to vector<8x256xf32>
    %12 = arith.maximumf %10, %11 : vector<8x256xf32>
    %cst_9 = arith.constant dense<0.000000e+00> : vector<8x128xf32>
    %13 = tpu.matmul %12, %2, %cst_9 {dimension_numbers = #tpu.dot_dimension_numbers<[1], [0], [0], [1], [0, 0, 1, 1], [], []>} : vector<8x256xf32>, vector<256x128xf32>, vector<8x128xf32> -> vector<8x128xf32>
    %14 = vector.broadcast %3 : vector<1x128xf32> to vector<8x128xf32>
    %15 = arith.addf %13, %14 : vector<8x128xf32>
    %cst_10 = arith.constant 0.000000e+00 : f32
    %16 = vector.broadcast %cst_10 : f32 to vector<8x128xf32>
    %17 = arith.maximumf %15, %16 : vector<8x128xf32>
    %18 = arith.index_cast %5 : i32 to index
    %c0_11 = arith.constant 0 : index
    %19 = vector.load %arg6[%18, %c0_11] : memref<8x128xf32, #tpu.memory_space<vmem>>, vector<8x128xf32>
    tpu.vector_store %arg6[%18, %c0_11], %17 {strides = array<i32>} : memref<8x128xf32, #tpu.memory_space<vmem>>, vector<8x128xf32>,
    %c1_i32 = arith.constant 1 : i32
    return
  }
  func.func @transform_0(%arg0: i32) -> (i32, i32) {
    %c0_i32 = arith.constant 0 : i32
    %c0_i32_0 = arith.constant 0 : i32
    return %arg0, %c0_i32 : i32, i32
  }
  func.func @transform_1(%arg0: i32) -> (i32, i32) {
    %c0_i32 = arith.constant 0 : i32
    %c0_i32_0 = arith.constant 0 : i32
    %c0_i32_1 = arith.constant 0 : i32
    return %c0_i32, %c0_i32_0 : i32, i32
  }
  func.func @transform_2(%arg0: i32) -> (i32, i32) {
    %c0_i32 = arith.constant 0 : i32
    %c0_i32_0 = arith.constant 0 : i32
    %c0_i32_1 = arith.constant 0 : i32
    return %c0_i32, %c0_i32_0 : i32, i32
  }
  func.func @transform_3(%arg0: i32) -> (i32, i32) {
    %c0_i32 = arith.constant 0 : i32
    %c0_i32_0 = arith.constant 0 : i32
    %c0_i32_1 = arith.constant 0 : i32
    return %c0_i32, %c0_i32_0 : i32, i32
  }
  func.func @transform_4(%arg0: i32) -> (i32, i32) {
    %c0_i32 = arith.constant 0 : i32
    %c0_i32_0 = arith.constant 0 : i32
    %c0_i32_1 = arith.constant 0 : i32
    return %c0_i32, %c0_i32_0 : i32, i32
  }
  func.func @transform_5(%arg0: i32) -> (i32, i32) {
    %c0_i32 = arith.constant 0 : i32
    %c0_i32_0 = arith.constant 0 : i32
    return %arg0, %c0_i32 : i32, i32
  }
}

</mosaic_0001>

<bundles_post_ra>
// kernel: tile.13
= control target key start
LH: loop header
LB: loop body
LE: loop exit
PB: predicated region body
PF: predicated region fallthrough
CT: control target
= control target key end

     0   :  { %s22_s0 = inlined_call_operand.vmem [shape: f32[32], index: 0, kind: input, shape index: {}]   ;;  %s23_s1 = inlined_call_operand.vmem [shape: f32[8,32], index: 1, kind: output, shape index: {}]  }
   0x1   :  { %v4_v0 = vld [vmem:[%s22_s0] ss:$0 sm:$0xff] }
   0x2   :  { %5 = vst [vmem:[%s23_s1] sm:$0xff] %v4_v0 }

// kernel: tile.14
= control target key start
LH: loop header
LB: loop body
LE: loop exit
PB: predicated region body
PF: predicated region fallthrough
CT: control target
= control target key end

     0   :  { %s7_s6 = smov 3  ;;  %s14_s9 = smov 3  ;;  %vm4_vm0 = vcmask 261120   ;;  %vm11_vm1 = vcmask 1048320   ;;  %vm18_vm2 = vcmask 785920   ;;  %vm25_vm3 = vcmask 523520   ;;  %s76_s0 = inlined_call_operand.vmem [shape: f32[8,32], index: 0, kind: input, shape index: {}]   ;;  %s77_s1 = inlined_call_operand.vmem [shape: f32[1,256], index: 1, kind: output, shape index: {}]  }
   0x1   :  { %v38_v0 = vld [vmem:[%s76_s0 + $0x3] ss:$4 sm:%s7_s6]   ;;  %s45_s10 = smov 96   ;;  %s21_s11 = smov 3  ;;  %v39_v1 = vld [vmem:[%s76_s0 + $0x2] ss:$4 sm:%s14_s9]  }
   0x2   :  { %9 = vrot.lane.b32.xlu0 %v38_v0, %s45_s10  ;;  %v40_v2 = vld [vmem:[%s76_s0 + $0x1] ss:$4 sm:%s21_s11]   ;;  %s2_s16 = smov 3  ;;  %s46_s17 = smov 32  }
   0x3   :  { %23 = vrot.lane.b32.xlu1 %v40_v2, %s46_s17  ;;  %v3_v3 = vld [vmem:[%s76_s0] ss:$4 sm:%s2_s16]   ;;  %s47_s0 = smov 64  }
   0x4   :  { %5 = vst.msk [vmem:[#allocation0] ss:$8 sm:$0x3] %vm4_vm0, %v3_v3  }
   0x6   :  { %16 = vrot.lane.b32.xlu0 %v39_v1, %s47_s0 }
  0x74   :  { %v10_v4 = vpop.permute.xlu0 %9  }
  0x75   :  { %12 = vst.msk [vmem:[#allocation0] ss:$8 sm:$0x3] %vm11_vm1, %v10_v4   ;;  %v24_v5 = vpop.permute.xlu1 %23  }
  0x78   :  { %v17_v6 = vpop.permute.xlu0 %16  }
  0x79   :  { %19 = vst.msk [vmem:[#allocation0] ss:$8 sm:$0x3] %vm18_vm2, %v17_v6  }
  0x7a   :  { %26 = vst.msk [vmem:[#allocation0] ss:$8 sm:$0x3] %vm25_vm3, %v24_v5  }
  0x81   :  { %v30_v7 = vld [vmem:[#allocation0] sm:$0x1]  ;;  %v34_v8 = vld [vmem:[#allocation0 + $0x8] sm:$0x1] }
  0x82   :  { %32 = vst [vmem:[%s77_s1] sm:$0x1] %v30_v7  ;;  %41 = vst [vmem:[%s77_s1 + $0x1] sm:$0x1] %v34_v8 }

// kernel: tile.18
= control target key start
LH: loop header
LB: loop body
LE: loop exit
PB: predicated region body
PF: predicated region fallthrough
CT: control target
= control target key end

     0   :  { %s22_s0 = inlined_call_operand.vmem [shape: f32[16], index: 0, kind: input, shape index: {}]   ;;  %s23_s1 = inlined_call_operand.vmem [shape: f32[8,16], index: 1, kind: output, shape index: {}]  }
   0x1   :  { %v4_v0 = vld [vmem:[%s22_s0] ss:$0 sm:$0xff] }
   0x2   :  { %5 = vst [vmem:[%s23_s1] sm:$0xff] %v4_v0 }

// kernel: tile.19
= control target key start
LH: loop header
LB: loop body
LE: loop exit
PB: predicated region body
PF: predicated region fallthrough
CT: control target
= control target key end

     0   :  { %s67_s10 = smov 112   ;;  %s68_s11 = smov 80   ;;  %vm3_vm0 = vcmask 130048   ;;  %vm9_vm1 = vcmask 1048448   ;;  %vm15_vm2 = vcmask 917248   ;;  %vm21_vm3 = vcmask 786048   ;;  %s111_s0 = inlined_call_operand.vmem [shape: f32[8,16], index: 0, kind: input, shape index: {}]   ;;  %s112_s1 = inlined_call_operand.vmem [shape: f32[1,128], index: 1, kind: output, shape index: {}]  }
   0x1   :  { %v53_v0 = vld [vmem:[%s111_s0 + $0x7] sm:$0x1]   ;;  %v55_v1 = vld [vmem:[%s111_s0 + $0x5] sm:$0x1]   ;;  %v54_v2 = vld [vmem:[%s111_s0 + $0x6] sm:$0x1]  }
   0x2   :  { %7 = vrot.lane.b32.xlu0 %v53_v0, %s67_s10  ;;  %19 = vrot.lane.b32.xlu1 %v55_v1, %s68_s11  ;;  %v56_v3 = vld [vmem:[%s111_s0 + $0x4] sm:$0x1]   ;;  %v2_v4 = vld [vmem:[%s111_s0] sm:$0x1]   ;;  %s69_s18 = smov 96   ;;  %s70_s19 = smov 64  }
   0x3   :  { %4 = vst.msk [vmem:[#allocation0] sm:$0x1] %vm3_vm0, %v2_v4   ;;  %v57_v5 = vld [vmem:[%s111_s0 + $0x3] sm:$0x1]   ;;  %v58_v6 = vld [vmem:[%s111_s0 + $0x2] sm:$0x1]  }
   0x4   :  { %s71_s24 = smov 48   ;;  %s72_s25 = smov 32   ;;  %v59_v7 = vld [vmem:[%s111_s0 + $0x1] sm:$0x1]   ;;  %vm27_vm4 = vcmask 654848   ;;  %vm33_vm5 = vcmask 523648  }
   0x5   :  { %s73_s0 = smov 16   ;;  %vm39_vm6 = vcmask 392448   ;;  %vm45_vm7 = vcmask 261248  }
   0x6   :  { %13 = vrot.lane.b32.xlu0 %v54_v2, %s69_s18  ;;  %25 = vrot.lane.b32.xlu1 %v56_v3, %s70_s19 }
   0xa   :  { %31 = vrot.lane.b32.xlu0 %v57_v5, %s71_s24  ;;  %37 = vrot.lane.b32.xlu1 %v58_v6, %s72_s25 }
   0xe   :  { %43 = vrot.lane.b32.xlu0 %v59_v7, %s73_s0 }
  0x74   :  { %v8_v8 = vpop.permute.xlu0 %7   ;;  %v20_v9 = vpop.permute.xlu1 %19  }
  0x75   :  { %10 = vst.msk [vmem:[#allocation0] sm:$0x1] %vm9_vm1, %v8_v8  }
  0x78   :  { %v14_v10 = vpop.permute.xlu0 %13   ;;  %v26_v11 = vpop.permute.xlu1 %25  }
  0x79   :  { %16 = vst.msk [vmem:[#allocation0] sm:$0x1] %vm15_vm2, %v14_v10  }
  0x7a   :  { %22 = vst.msk [vmem:[#allocation0] sm:$0x1] %vm21_vm3, %v20_v9  }
  0x7b   :  { %28 = vst.msk [vmem:[#allocation0] sm:$0x1] %vm27_vm4, %v26_v11  }
  0x7c   :  { %v32_v12 = vpop.permute.xlu0 %31   ;;  %v38_v13 = vpop.permute.xlu1 %37  }
  0x7d   :  { %34 = vst.msk [vmem:[#allocation0] sm:$0x1] %vm33_vm5, %v32_v12  }
  0x7e   :  { %40 = vst.msk [vmem:[#allocation0] sm:$0x1] %vm39_vm6, %v38_v13  }
  0x80   :  { %v44_v14 = vpop.permute.xlu0 %43  }
  0x81   :  { %46 = vst.msk [vmem:[#allocation0] sm:$0x1] %vm45_vm7, %v44_v14  }
  0x88   :  { %v50_v15 = vld [vmem:[#allocation0] sm:$0x1] }
  0x89   :  { %52 = vst [vmem:[%s112_s1] sm:$0x1] %v50_v15 }

// kernel: shared_mlp.1
= control target key start
LH: loop header
LB: loop body
LE: loop exit
PB: predicated region body
PF: predicated region fallthrough
CT: control target
= control target key end

     0   :  { %s616_s18 = smov 0   ;;  %s766_s0 = inlined_call_operand.vmem [shape: f32[64,32], index: 0, kind: input, shape index: {}]   ;;  %s767_s1 = inlined_call_operand.vmem [shape: f32[32,256], index: 1, kind: input, shape index: {}]   ;;  %s768_s2 = inlined_call_operand.vmem [shape: f32[1,256], index: 2, kind: input, shape index: {}]   ;;  %s769_s3 = inlined_call_operand.vmem [shape: f32[256,128], index: 3, kind: input, shape index: {}]   ;;  %s770_s4 = inlined_call_operand.vmem [shape: f32[1,128], index: 4, kind: input, shape index: {}]   ;;  %s771_s5 = inlined_call_operand.vmem [shape: f32[64,128], index: 5, kind: output, shape index: {}]  }
   0x1 LB: > { %s482_s19 = sadd.s32 4294967295, %s583_s18   ;;  %p486_p0 = scmp.ge.s32.totalorder %s583_s18, 1  ;;  %s583_s18 = sphi %s616_s18, %s15_s18  }
   0x2   : > { %p186_p1 = scmp.lt.s32.totalorder %s583_s18, 9 }
   0x4   : > { %p187_p2 = pnand %p486_p0, %p186_p1 }
   0x5   : > { %v221_v0 = vld [vmem:[%s767_s1 + $0x8] sm:$0xff] (!%p187_p2)  ;;  %v223_v1 = vld [vmem:[%s767_s1 + $0x18] sm:$0xff] (!%p187_p2)  ;;  %v220_v2 = vld [vmem:[%s767_s1] sm:$0xff] (!%p187_p2)  ;;  %p212_p3 = scmp.lt.s32.totalorder (!%p187_p2), %s482_s19, 7  ;;  %v585_v7 = vmov (!%p187_p2), 0.0   ;;  %vm274_vm0 = vcmask (!%p187_p2), 261120   ;;  %v264_v62 = vlaneseq (!%p187_p2) }
   0x6   : > { %190 = sbr.rel (%p187_p2) target bundleno = 455 (0x1c7), region = 40  ;;  %v528_v3 = vpack.c.bf16 (!%p187_p2), %v223_v1, %v221_v0  ;;  %v222_v4 = vld [vmem:[%s767_s1 + $0x10] sm:$0xff] (!%p187_p2)  ;;  %v225_v5 = vld [vmem:[%s767_s1 + $0x28] sm:$0xff] (!%p187_p2)  ;;  %v227_v6 = vld [vmem:[%s767_s1 + $0x38] sm:$0xff] (!%p187_p2)  ;;  %342 = vmatprep.mubr.f32.mxu0 (!%p187_p2), %v585_v7 }
   0x7   : > { %v530_v8 = vpack.c.bf16 (!%p187_p2), %v222_v4, %v220_v2  ;;  %v532_v9 = vpack.c.bf16 (!%p187_p2), %v227_v6, %v225_v5  ;;  %v224_v10 = vld [vmem:[%s767_s1 + $0x20] sm:$0xff] (!%p187_p2)  ;;  %v226_v11 = vld [vmem:[%s767_s1 + $0x30] sm:$0xff] (!%p187_p2)  ;;  %v246_v13 = vld [vmem:[%s769_s3 + $0x88] sm:$0xff] (!%p187_p2)  ;;  %v265_v63 = vshrl.u32 (!%p187_p2), %v264_v62, 7 }
   0x8   : > { %v245_v12 = vld [vmem:[%s769_s3 + $0x80] sm:$0xff] (!%p187_p2)  ;;  %529 = vmatprep.subr.bf16.mxu0 (!%p187_p2), %v528_v3  ;;  %v230_v15 = vld [vmem:[%s769_s3 + $0x8] sm:$0xff] (!%p187_p2)  ;;  %v534_v16 = vpack.c.bf16 (!%p187_p2), %v226_v11, %v224_v10  ;;  %v247_v19 = vld [vmem:[%s769_s3 + $0x90] sm:$0xff] (!%p187_p2) }
   0x9   : > { %v229_v14 = vld [vmem:[%s769_s3] sm:$0xff] (!%p187_p2)  ;;  %531 = vmatpush1.bf16.msra.mxu0 (!%p187_p2), %v530_v8  ;;  %v536_v17 = vpack.c.bf16 (!%p187_p2), %v246_v13, %v245_v12  ;;  %v248_v20 = vld [vmem:[%s769_s3 + $0x98] sm:$0xff] (!%p187_p2)  ;;  %v231_v21 = vld [vmem:[%s769_s3 + $0x10] sm:$0xff] (!%p187_p2)  ;;  %v266_v0 = vsub.s32 (!%p187_p2), 0, %v265_v63  ;;  %v270_v2 = vsub.s32 (!%p187_p2), 1, %v265_v63 }
   0xa   : > { %v538_v18 = vpack.c.bf16 (!%p187_p2), %v230_v15, %v229_v14  ;;  %533 = vmatprep.subr.bf16.mxu0 (!%p187_p2), %v532_v9  ;;  %v540_v22 = vpack.c.bf16 (!%p187_p2), %v248_v20, %v247_v19  ;;  %v232_v23 = vld [vmem:[%s769_s3 + $0x18] sm:$0xff] (!%p187_p2)  ;;  %v249_v24 = vld [vmem:[%s769_s3 + $0xa0] sm:$0xff] (!%p187_p2)  ;;  %v250_v25 = vld [vmem:[%s769_s3 + $0xa8] sm:$0xff] (!%p187_p2) }
   0xb   : > { %537 = vmatprep.subr.bf16.mxu1 (!%p187_p2), %v536_v17  ;;  %v542_v26 = vpack.c.bf16 (!%p187_p2), %v232_v23, %v231_v21  ;;  %v544_v28 = vpack.c.bf16 (!%p187_p2), %v250_v25, %v249_v24  ;;  %v233_v29 = vld [vmem:[%s769_s3 + $0x20] sm:$0xff] (!%p187_p2)  ;;  %v234_v30 = vld [vmem:[%s769_s3 + $0x28] sm:$0xff] (!%p187_p2)  ;;  %v251_v31 = vld [vmem:[%s769_s3 + $0xb0] sm:$0xff] (!%p187_p2) }
   0xc   : > { %539 = vmatpush3.bf16.msra.mxu1 (!%p187_p2), %v538_v18  ;;  %v252_v32 = vld [vmem:[%s769_s3 + $0xb8] sm:$0xff] (!%p187_p2)  ;;  %v546_v33 = vpack.c.bf16 (!%p187_p2), %v234_v30, %v233_v29  ;;  %v235_v35 = vld [vmem:[%s769_s3 + $0x30] sm:$0xff] (!%p187_p2)  ;;  %v253_v37 = vld [vmem:[%s769_s3 + $0xc0] sm:$0xff] (!%p187_p2) }
   0xd   : > { %s773_s19 = smov (!%p212_p3, %s482_s19), 7  ;;  %535 = vmatpush1.bf16.msra.mxu0 %v534_v16  ;;  %541 = vmatprep.subr.bf16.mxu1 %v540_v22  ;;  %v548_v34 = vpack.c.bf16 %v252_v32, %v251_v31  ;;  %v236_v36 = vld [vmem:[%s769_s3 + $0x38] sm:$0xff]  ;;  %v254_v38 = vld [vmem:[%s769_s3 + $0xc8] sm:$0xff]  ;;  %v237_v41 = vld [vmem:[%s769_s3 + $0x40] sm:$0xff] }
   0xe   : > { %s487_s21 = sshll.u32 %s773_s19, 3  ;;  %v550_v39 = vpack.c.bf16 %v236_v36, %v235_v35  ;;  %v552_v40 = vpack.c.bf16 %v254_v38, %v253_v37  ;;  %v238_v42 = vld [vmem:[%s769_s3 + $0x48] sm:$0xff]  ;;  %v255_v43 = vld [vmem:[%s769_s3 + $0xd0] sm:$0xff]  ;;  %v256_v44 = vld [vmem:[%s769_s3 + $0xd8] sm:$0xff] }
   0xf   : > { %s215_s30 = scalar_lea.vmem %s766_s0, %s487_s21  ;;  %v554_v45 = vpack.c.bf16 %v238_v42, %v237_v41  ;;  %v556_v46 = vpack.c.bf16 %v256_v44, %v255_v43  ;;  %v239_v47 = vld [vmem:[%s769_s3 + $0x50] sm:$0xff]  ;;  %v240_v48 = vld [vmem:[%s769_s3 + $0x58] sm:$0xff]  ;;  %v257_v49 = vld [vmem:[%s769_s3 + $0xe0] sm:$0xff]  ;;  %s219_s20 = scalar_lea.vmem %s771_s5, %s487_s21 }
  0x10   : > { %v262_v27 = vld [vmem:[%s215_s30] sm:$0xff]  ;;  %543 = vmatpush3.bf16.msra.mxu1 %v542_v26  ;;  %v258_v50 = vld [vmem:[%s769_s3 + $0xe8] sm:$0xff]  ;;  %v558_v51 = vpack.c.bf16 %v240_v48, %v239_v47  ;;  %v259_v56 = vld [vmem:[%s769_s3 + $0xf0] sm:$0xff] }
  0x11   : > { %489 = vmatmul.mubr.msk.f32.vlgmr.msra.gmra.mrb[0].mxu0 %vm274_vm0, %v262_v27  ;;  %545 = vmatprep.subr.bf16.mxu1 %v544_v28  ;;  %v560_v52 = vpack.c.bf16 %v258_v50, %v257_v49  ;;  %v241_v53 = vld [vmem:[%s769_s3 + $0x60] sm:$0xff]  ;;  %v242_v54 = vld [vmem:[%s769_s3 + $0x68] sm:$0xff]  ;;  %v260_v57 = vld [vmem:[%s769_s3 + $0xf8] sm:$0xff] }
  0x12   : > { %v562_v55 = vpack.c.bf16 %v242_v54, %v241_v53  ;;  %v564_v58 = vpack.c.bf16 %v260_v57, %v259_v56  ;;  %v243_v59 = vld [vmem:[%s769_s3 + $0x70] sm:$0xff]  ;;  %v244_v60 = vld [vmem:[%s769_s3 + $0x78] sm:$0xff]  ;;  %v228_v1 = vld [vmem:[%s768_s2] sm:$0x3] }
  0x13   : > { %v566_v61 = vpack.c.bf16 %v244_v60, %v243_v59  ;;  %v267_v3 = vrot.slane %v228_v1, %v266_v0  ;;  %v271_v4 = vrot.slane %v228_v1, %v270_v2  ;;  %v490_v12 = vld [vmem:[%s770_s4] ss:$0 sm:$0xff] }
  0x14   : > { %547 = vmatpush3.bf16.msra.mxu1 %v546_v33 }
  0x15   : > { %549 = vmatprep.subr.bf16.mxu1 %v548_v34 }
  0x18   : > { %551 = vmatpush3.bf16.msra.mxu1 %v550_v39 }
  0x19   : > { %553 = vmatprep.subr.bf16.mxu1 %v552_v40 }
  0x1c   : > { %555 = vmatpush3.bf16.msra.mxu1 %v554_v45 }
  0x1d   : > { %557 = vmatprep.subr.bf16.mxu1 %v556_v46 }
  0x20   : > { %559 = vmatpush3.bf16.msra.mxu1 %v558_v51 }
  0x21   : > { %561 = vmatprep.subr.bf16.mxu1 %v560_v52 }
  0x24   : > { %563 = vmatpush3.bf16.msra.mxu1 %v562_v55 }
  0x25   : > { %565 = vmatprep.subr.bf16.mxu1 %v564_v58 }
  0x28   : > { %567 = vmatpush3.bf16.msra.mxu1 %v566_v61 }
  0xe4   : > { %v344_v5 = vpop.f32.mrb[0].mxu0 }
  0xe5   : > { %v345_v6 = vadd.f32 %v344_v5, %v267_v3  ;;  %v346_v7 = vpop.f32.mrb[1].mxu0 }
  0xe6   : > { %v347_v8 = vadd.f32 %v346_v7, %v271_v4 }
  0xe7   : > { %v349_v10 = vmax.f32 %v345_v6, 0.0 }
  0xe8   : > { %v350_v9 = vmax.f32 %v347_v8, 0.0 }
  0xea   : > { %421 = vmatprep.mubr.f32.mxu1 %v350_v9 }
  0xeb   : > { %422 = vmatmul.mubr.f32.vlgmr.msra.gmra.mrb[0].mxu1 %v349_v10 }
 0x1be   : > { %v525_v11 = vpop.f32.mrb[0].mxu1 }
 0x1bf   : > { %v526_v13 = vpop.f32.mrb[1].mxu1 }
 0x1c0   : > { %v527_v14 = vadd.f32 %v526_v13, %v525_v11 }
 0x1c2   : > { %v424_v15 = vadd.f32 %v527_v14, %v490_v12 }
 0x1c4   : > { %v427_v16 = vmax.f32 %v424_v15, 0.0 }
 0x1c6   : > { %428 = vst [vmem:[%s219_s20] sm:$0xff] %v427_v16 }
 0x1c7 PF: > { %s15_s18 = sadd.s32 1, %s583_s18  }
 0x1c8   : > { %p12_p4 = scmp.ge.s32.totalorder %s15_s18, 10  }
 0x1ca   :  { %14 = sbr.rel (!%p12_p4) target bundleno = 1 (0x1), region = 70 }

</bundles_post_ra>
